<compile_context>
chip_gen: v5e
topology: v5e:2x2
jax: 0.10.0
libtpu: 0.0.40
codegen_flags: <defaults>
</compile_context>

<pallas_src>
import functools

import jax
import jax.numpy as jnp
from jax.experimental import pallas as pl
from jax.experimental.pallas import tpu as pltpu


def _round_up(v, m):
    return (v + m - 1) // m * m


def _gated_conv_kernel(x_ref, w_ref, b_ref, gw_ref, gb_ref, o_ref, patches_ref,
                       *, H, W, cin, cin_pad, cout, experts):
    # x_ref:       (1, Cin, HW)          f32  streamed activation tile (flat, channels-first)
    # w_ref:       (E*Cout, 9*cin_pad)   bf16 stacked expert weights (batch-stationary)
    # b_ref:       (E*Cout, 1)           f32  stacked expert biases  (batch-stationary)
    # gw_ref:      (Cin, E)              f32  gate linear weight, transposed (stationary)
    # gb_ref:      (1, E)                f32  gate linear bias (stationary)
    # o_ref:       (1, Cout, HW)              lane-dense output (reshapes straight to NCHW)
    # patches_ref: (9*cin_pad, HW)       f32  VMEM scratch holding the 3x3 taps
    HW = H * W
    x = x_ref[0]                                                    # (Cin, HW) f32

    # ---- gating: mean pool + linear + softmax from the VMEM-resident tile ----
    ymean = jnp.sum(x, axis=1, keepdims=True) * (1.0 / HW)          # (Cin, 1)
    scores = jnp.sum(gw_ref[...] * ymean, axis=0, keepdims=True) + gb_ref[...]  # (1, E)
    scores = scores - jnp.max(scores, axis=1, keepdims=True)
    eg = jnp.exp(scores)                                            # EUP
    g = eg / jnp.sum(eg, axis=1, keepdims=True)                     # (1, E) f32

    # ---- build the 9 shifted taps straight into the sublane-aligned scratch ----
    # The un-written head/tail lane strips of each tap group encode the top/bottom zero
    # padding of the conv; re-zero every step so the kernel stays correct when the grid
    # is split across TensorCores ("parallel" semantics).
    patches_ref[...] = jnp.zeros(patches_ref.shape, patches_ref.dtype)

    # Hoisted column-boundary masks (broadcasts are not CSE'd, so build them once).
    col = jax.lax.broadcasted_iota(jnp.int32, (cin, HW), 1) % W
    not_left = (col != 0).astype(jnp.float32)                       # kills dw == -1 wrap
    not_right = (col != (W - 1)).astype(jnp.float32)                # kills dw == +1 wrap

    for t, (dh, dw) in enumerate((dh, dw) for dh in (-1, 0, 1) for dw in (-1, 0, 1)):
        s = dh * W + dw                                             # flat lane shift
        dst_start = max(0, -s)
        width = HW - abs(s)
        src_start = dst_start + s
        v = x[:, src_start:src_start + width]                       # (Cin, width) static slice
        if dw == -1:
            v = v * not_left[:, dst_start:dst_start + width]
        elif dw == 1:
            v = v * not_right[:, dst_start:dst_start + width]
        patches_ref[pl.ds(t * cin_pad, cin), pl.ds(dst_start, width)] = v

    # ---- one stacked MXU matmul for all experts: (E*Cout, K) @ (K, HW) ----
    acc = jnp.dot(w_ref[...], patches_ref[...].astype(jnp.bfloat16),
                  preferred_element_type=jnp.float32)               # (E*Cout, HW) f32
    acc = acc + b_ref[...]

    # ---- gate-weighted combine of the expert row groups on the VPU ----
    out = None
    for e in range(experts):
        part = acc[e * cout:(e + 1) * cout, :] * g[:, e:e + 1]      # (Cout, HW)
        out = part if out is None else out + part
    o_ref[0] = out.astype(o_ref.dtype)


def gated_sum_conv2d(x_nchw, conv_w, conv_b, gate_w, gate_b):
    """x_nchw: (B, Cin, H, W); conv_w: (E, Cout, Cin, 3, 3); conv_b: (E, Cout);
    gate_w: (E, Cin) [torch Linear layout]; gate_b: (E,). Returns (B, Cout, H, W)."""
    B, Cin, H, W = x_nchw.shape
    E, Cout, KH, KW = conv_w.shape[0], conv_w.shape[1], conv_w.shape[3], conv_w.shape[4]
    assert (KH, KW) == (3, 3)
    HW = H * W
    cin_pad = _round_up(Cin, 8)                 # sublane-aligned tap groups
    K = KH * KW * cin_pad

    # ---- parameter packing (tiny, parameter-sized; no activation traffic) ----
    # K order (kh, kw, ci) with ci padded to cin_pad matches the in-kernel tap layout.
    w_t = jnp.transpose(conv_w, (0, 1, 3, 4, 2))                    # (E, Cout, 3, 3, Cin)
    if cin_pad != Cin:
        w_t = jnp.pad(w_t, ((0, 0), (0, 0), (0, 0), (0, 0), (0, cin_pad - Cin)))
    w_stack = w_t.reshape(E * Cout, K).astype(jnp.bfloat16)         # (E*Cout, K)
    b_stack = conv_b.reshape(E * Cout, 1).astype(jnp.float32)       # (E*Cout, 1)
    gw_t = gate_w.T.astype(jnp.float32)                             # (Cin, E)
    gb_row = gate_b.reshape(1, E).astype(jnp.float32)               # (1, E)

    x_flat = x_nchw.reshape(B, Cin, HW)                             # pure reshape, no copy

    kernel = functools.partial(_gated_conv_kernel, H=H, W=W, cin=Cin,
                               cin_pad=cin_pad, cout=Cout, experts=E)

    cost = pl.CostEstimate(
        flops=2 * B * (E * Cout) * K * HW,
        transcendentals=B * E,
        bytes_accessed=(B * Cin * HW * 4 + E * Cout * K * 2 + E * Cout * 4
                        + Cin * E * 4 + E * 4 + B * Cout * HW * 4),
    )

    out_flat = pl.pallas_call(
        kernel,
        out_shape=jax.ShapeDtypeStruct((B, Cout, HW), x_nchw.dtype),
        grid=(B,),
        in_specs=[
            pl.BlockSpec((1, Cin, HW), lambda b: (b, 0, 0)),        # streamed activations
            pl.BlockSpec((E * Cout, K), lambda b: (0, 0)),          # stationary expert weights
            pl.BlockSpec((E * Cout, 1), lambda b: (0, 0)),          # stationary expert biases
            pl.BlockSpec((Cin, E), lambda b: (0, 0)),               # stationary gate weight^T
            pl.BlockSpec((1, E), lambda b: (0, 0)),                 # stationary gate bias
        ],
        out_specs=pl.BlockSpec((1, Cout, HW), lambda b: (b, 0, 0)),
        scratch_shapes=[pltpu.VMEM((KH * KW * cin_pad, HW), jnp.float32)],
        compiler_params=pltpu.CompilerParams(dimension_semantics=("parallel",)),
        cost_estimate=cost,
    )(x_flat, w_stack, b_stack, gw_t, gb_row)

    # (B, Cout, HW) is already NCHW-ordered — plain reshape, no transpose.
    return out_flat.reshape(B, Cout, H, W)


if __name__ == "__main__":
    key = jax.random.PRNGKey(0)
    B, Cin, H, W = 2, 4, 16, 16
    E, Cout, KH, KW = 4, 8, 3, 3        # head_num = 4 experts, each Conv2d(4->8, 3x3, pad=1)

    k1, k2, k3, k4, k5 = jax.random.split(key, 5)
    x = jax.random.normal(k1, (B, Cin, H, W), jnp.float32)
    conv_w = 0.1 * jax.random.normal(k2, (E, Cout, Cin, KH, KW), jnp.float32)
    conv_b = 0.1 * jax.random.normal(k3, (E, Cout), jnp.float32)
    gate_w = 0.1 * jax.random.normal(k4, (E, Cin), jnp.float32)     # torch Linear weight (head_num, input_dim)
    gate_b = 0.1 * jax.random.normal(k5, (E,), jnp.float32)

    out = gated_sum_conv2d(x, conv_w, conv_b, gate_w, gate_b)
    out = jax.block_until_ready(out)

    # pure-JAX reference for sanity (matches the PyTorch module at f32)
    y = jnp.mean(x, axis=(2, 3))
    g_ref = jax.nn.softmax(y @ gate_w.T + gate_b, axis=-1)
    experts = []
    for e in range(E):
        ce = jax.lax.conv_general_dilated(
            x, conv_w[e], window_strides=(1, 1), padding=((1, 1), (1, 1)),
            dimension_numbers=("NCHW", "OIHW", "NCHW"))
        experts.append(ce + conv_b[e][None, :, None, None])
    expert_outputs = jnp.stack(experts, axis=-1)                    # (B, Cout, H, W, E)
    ref = jnp.sum(g_ref[:, None, None, None, :] * expert_outputs, axis=-1)

    err = float(jnp.max(jnp.abs(out - ref)))
    assert jnp.allclose(out, ref, rtol=2e-2, atol=2e-2), err
    print("KERNEL_OK")
</pallas_src>

<mosaic_0001>
module attributes {stable_mosaic.version = 11 : i64} {
  func.func @_gated_conv_kernel(%arg0: i32, %arg1: memref<1x4x256xf32, #tpu.memory_space<vmem>>, %arg2: memref<32x72xbf16, #tpu.memory_space<vmem>>, %arg3: memref<32x1xf32, #tpu.memory_space<vmem>>, %arg4: memref<4x4xf32, #tpu.memory_space<vmem>>, %arg5: memref<1x4xf32, #tpu.memory_space<vmem>>, %arg6: memref<1x8x256xf32, #tpu.memory_space<vmem>>, %arg7: memref<72x256xf32, #tpu.memory_space<vmem>>) attributes {dimension_semantics = [#tpu.dimension_semantics<parallel>], iteration_bounds = array<i64: 2>, scalar_prefetch = 0 : i64, scratch_operands = 1 : i64, tpu.core_type = #tpu.core_type<tc>, window_params = [{transform_indices = @transform_0, window_bounds = array<i64: 1, 4, 256>}, {pipeline_mode = #tpu.pipeline_mode<synchronous>, transform_indices = @transform_1, window_bounds = array<i64: 32, 72>}, {pipeline_mode = #tpu.pipeline_mode<synchronous>, transform_indices = @transform_2, window_bounds = array<i64: 32, 1>}, {pipeline_mode = #tpu.pipeline_mode<synchronous>, transform_indices = @transform_3, window_bounds = array<i64: 4, 4>}, {pipeline_mode = #tpu.pipeline_mode<synchronous>, transform_indices = @transform_4, window_bounds = array<i64: 1, 4>}, {transform_indices = @transform_5, window_bounds = array<i64: 1, 8, 256>}]} {
    %c0 = arith.constant 0 : index
    %c0_0 = arith.constant 0 : index
    %c0_1 = arith.constant 0 : index
    %0 = vector.load %arg1[%c0, %c0_0, %c0_1] : memref<1x4x256xf32, #tpu.memory_space<vmem>>, vector<1x4x256xf32>
    %1 = vector.shape_cast %0 : vector<1x4x256xf32> to vector<4x256xf32>
    %cst = arith.constant dense<0.000000e+00> : vector<4xf32>
    %2 = vector.multi_reduction <add>, %1, %cst [1] : vector<4x256xf32> to vector<4xf32>
    %3 = vector.shape_cast %2 : vector<4xf32> to vector<4x1xf32>
    %cst_2 = arith.constant 3.906250e-03 : f32
    %4 = vector.broadcast %cst_2 : f32 to vector<4x1xf32>
    %5 = arith.mulf %3, %4 : vector<4x1xf32>
    %c0_3 = arith.constant 0 : index
    %c0_4 = arith.constant 0 : index
    %6 = vector.load %arg4[%c0_3, %c0_4] : memref<4x4xf32, #tpu.memory_space<vmem>>, vector<4x4xf32>
    %7 = vector.broadcast %5 : vector<4x1xf32> to vector<4x4xf32>
    %8 = arith.mulf %6, %7 : vector<4x4xf32>
    %cst_5 = arith.constant dense<0.000000e+00> : vector<4xf32>
    %9 = vector.multi_reduction <add>, %8, %cst_5 [0] : vector<4x4xf32> to vector<4xf32>
    %10 = vector.shape_cast %9 : vector<4xf32> to vector<1x4xf32>
    %c0_6 = arith.constant 0 : index
    %c0_7 = arith.constant 0 : index
    %11 = vector.load %arg5[%c0_6, %c0_7] : memref<1x4xf32, #tpu.memory_space<vmem>>, vector<1x4xf32>
    %12 = arith.addf %10, %11 : vector<1x4xf32>
    %cst_8 = arith.constant dense<0xFF800000> : vector<1xf32>
    %13 = vector.multi_reduction <maximumf>, %12, %cst_8 [1] : vector<1x4xf32> to vector<1xf32>
    %14 = vector.shape_cast %13 : vector<1xf32> to vector<1x1xf32>
    %15 = vector.broadcast %14 : vector<1x1xf32> to vector<1x4xf32>
    %16 = arith.subf %12, %15 : vector<1x4xf32>
    %17 = math.exp %16 : vector<1x4xf32>
    %cst_9 = arith.constant dense<0.000000e+00> : vector<1xf32>
    %18 = vector.multi_reduction <add>, %17, %cst_9 [1] : vector<1x4xf32> to vector<1xf32>
    %19 = vector.shape_cast %18 : vector<1xf32> to vector<1x1xf32>
    %20 = vector.broadcast %19 : vector<1x1xf32> to vector<1x4xf32>
    %21 = arith.divf %17, %20 : vector<1x4xf32>
    %cst_10 = arith.constant 0.000000e+00 : f32
    %22 = vector.broadcast %cst_10 : f32 to vector<72x256xf32>
    %c0_11 = arith.constant 0 : index
    %c0_12 = arith.constant 0 : index
    %23 = vector.load %arg7[%c0_11, %c0_12] : memref<72x256xf32, #tpu.memory_space<vmem>>, vector<72x256xf32>
    tpu.vector_store %arg7[%c0_11, %c0_12], %22 {strides = array<i32>} : memref<72x256xf32, #tpu.memory_space<vmem>>, vector<72x256xf32>,
    %24 = tpu.iota {dimensions = array<i32: 1>} : vector<4x256xi32>
    %c16_i32 = arith.constant 16 : i32
    %c0_i32 = arith.constant 0 : i32
    %25 = arith.cmpi eq, %c16_i32, %c0_i32 : i32
    %c1_i32 = arith.constant 1 : i32
    %26 = arith.select %25, %c1_i32, %c16_i32 : i32
    %27 = vector.broadcast %26 : i32 to vector<4x256xi32>
    %28 = arith.remsi %24, %27 : vector<4x256xi32>
    %c0_i32_13 = arith.constant 0 : i32
    %29 = vector.broadcast %c0_i32_13 : i32 to vector<4x256xi32>
    %30 = arith.cmpi ne, %28, %29 : vector<4x256xi32>
    %c0_i32_14 = arith.constant 0 : i32
    %31 = vector.broadcast %c0_i32_14 : i32 to vector<4x256xi32>
    %32 = arith.cmpi slt, %28, %31 : vector<4x256xi32>
    %c0_i32_15 = arith.constant 0 : i32
    %33 = arith.cmpi slt, %26, %c0_i32_15 : i32
    %34 = vector.broadcast %33 : i1 to vector<4x256xi1>
    %35 = vector.broadcast %34 : vector<4x256xi1> to vector<4x256xi1>
    %36 = arith.xori %32, %35 : vector<4x256xi1>
    %37 = arith.andi %36, %30 : vector<4x256xi1>
    %38 = vector.broadcast %26 : i32 to vector<4x256xi32>
    %39 = arith.addi %28, %38 : vector<4x256xi32>
    %40 = arith.select %37, %39, %28 : vector<4x256xi1>, vector<4x256xi32>
    %c0_i32_16 = arith.constant 0 : i32
    %41 = vector.broadcast %c0_i32_16 : i32 to vector<4x256xi32>
    %42 = arith.cmpi ne, %40, %41 : vector<4x256xi32>
    %43 = arith.extui %42 : vector<4x256xi1> to vector<4x256xi32>
    %44 = arith.sitofp %43 : vector<4x256xi32> to vector<4x256xf32>
    %c15_i32 = arith.constant 15 : i32
    %45 = vector.broadcast %c15_i32 : i32 to vector<4x256xi32>
    %46 = arith.cmpi ne, %40, %45 : vector<4x256xi32>
    %47 = arith.extui %46 : vector<4x256xi1> to vector<4x256xi32>
    %48 = arith.sitofp %47 : vector<4x256xi32> to vector<4x256xf32>
    %49 = vector.extract_strided_slice %1 {offsets = [0, 0], sizes = [4, 239], strides = [1, 1]} : vector<4x256xf32> to vector<4x239xf32>
    %50 = vector.extract_strided_slice %44 {offsets = [0, 17], sizes = [4, 239], strides = [1, 1]} : vector<4x256xf32> to vector<4x239xf32>
    %51 = arith.mulf %49, %50 : vector<4x239xf32>
    %c0_17 = arith.constant 0 : index
    %c17 = arith.constant 17 : index
    %52 = vector.load %arg7[%c0_17, %c17] : memref<72x256xf32, #tpu.memory_space<vmem>>, vector<4x239xf32>
    tpu.vector_store %arg7[%c0_17, %c17], %51 {strides = array<i32>} : memref<72x256xf32, #tpu.memory_space<vmem>>, vector<4x239xf32>,
    %53 = vector.extract_strided_slice %1 {offsets = [0, 0], sizes = [4, 240], strides = [1, 1]} : vector<4x256xf32> to vector<4x240xf32>
    %c8 = arith.constant 8 : index
    %c16 = arith.constant 16 : index
    %54 = vector.load %arg7[%c8, %c16] : memref<72x256xf32, #tpu.memory_space<vmem>>, vector<4x240xf32>
    tpu.vector_store %arg7[%c8, %c16], %53 {strides = array<i32>} : memref<72x256xf32, #tpu.memory_space<vmem>>, vector<4x240xf32>,
    %55 = vector.extract_strided_slice %1 {offsets = [0, 0], sizes = [4, 241], strides = [1, 1]} : vector<4x256xf32> to vector<4x241xf32>
    %56 = vector.extract_strided_slice %48 {offsets = [0, 15], sizes = [4, 241], strides = [1, 1]} : vector<4x256xf32> to vector<4x241xf32>
    %57 = arith.mulf %55, %56 : vector<4x241xf32>
    %c16_18 = arith.constant 16 : index
    %c15 = arith.constant 15 : index
    %58 = vector.load %arg7[%c16_18, %c15] : memref<72x256xf32, #tpu.memory_space<vmem>>, vector<4x241xf32>
    tpu.vector_store %arg7[%c16_18, %c15], %57 {strides = array<i32>} : memref<72x256xf32, #tpu.memory_space<vmem>>, vector<4x241xf32>,
    %59 = vector.extract_strided_slice %1 {offsets = [0, 0], sizes = [4, 255], strides = [1, 1]} : vector<4x256xf32> to vector<4x255xf32>
    %60 = vector.extract_strided_slice %44 {offsets = [0, 1], sizes = [4, 255], strides = [1, 1]} : vector<4x256xf32> to vector<4x255xf32>
    %61 = arith.mulf %59, %60 : vector<4x255xf32>
    %c24 = arith.constant 24 : index
    %c1 = arith.constant 1 : index
    %62 = vector.load %arg7[%c24, %c1] : memref<72x256xf32, #tpu.memory_space<vmem>>, vector<4x255xf32>
    tpu.vector_store %arg7[%c24, %c1], %61 {strides = array<i32>} : memref<72x256xf32, #tpu.memory_space<vmem>>, vector<4x255xf32>,
    %c32 = arith.constant 32 : index
    %c0_19 = arith.constant 0 : index
    %63 = vector.load %arg7[%c32, %c0_19] : memref<72x256xf32, #tpu.memory_space<vmem>>, vector<4x256xf32>
    tpu.vector_store %arg7[%c32, %c0_19], %1 {strides = array<i32>} : memref<72x256xf32, #tpu.memory_space<vmem>>, vector<4x256xf32>,
    %64 = vector.extract_strided_slice %1 {offsets = [0, 1], sizes = [4, 255], strides = [1, 1]} : vector<4x256xf32> to vector<4x255xf32>
    %65 = vector.extract_strided_slice %48 {offsets = [0, 0], sizes = [4, 255], strides = [1, 1]} : vector<4x256xf32> to vector<4x255xf32>
    %66 = arith.mulf %64, %65 : vector<4x255xf32>
    %c40 = arith.constant 40 : index
    %c0_20 = arith.constant 0 : index
    %67 = vector.load %arg7[%c40, %c0_20] : memref<72x256xf32, #tpu.memory_space<vmem>>, vector<4x255xf32>
    tpu.vector_store %arg7[%c40, %c0_20], %66 {strides = array<i32>} : memref<72x256xf32, #tpu.memory_space<vmem>>, vector<4x255xf32>,
    %68 = vector.extract_strided_slice %1 {offsets = [0, 15], sizes = [4, 241], strides = [1, 1]} : vector<4x256xf32> to vector<4x241xf32>
    %69 = vector.extract_strided_slice %44 {offsets = [0, 0], sizes = [4, 241], strides = [1, 1]} : vector<4x256xf32> to vector<4x241xf32>
    %70 = arith.mulf %68, %69 : vector<4x241xf32>
    %c48 = arith.constant 48 : index
    %c0_21 = arith.constant 0 : index
    %71 = vector.load %arg7[%c48, %c0_21] : memref<72x256xf32, #tpu.memory_space<vmem>>, vector<4x241xf32>
    tpu.vector_store %arg7[%c48, %c0_21], %70 {strides = array<i32>} : memref<72x256xf32, #tpu.memory_space<vmem>>, vector<4x241xf32>,
    %72 = vector.extract_strided_slice %1 {offsets = [0, 16], sizes = [4, 240], strides = [1, 1]} : vector<4x256xf32> to vector<4x240xf32>
    %c56 = arith.constant 56 : index
    %c0_22 = arith.constant 0 : index
    %73 = vector.load %arg7[%c56, %c0_22] : memref<72x256xf32, #tpu.memory_space<vmem>>, vector<4x240xf32>
    tpu.vector_store %arg7[%c56, %c0_22], %72 {strides = array<i32>} : memref<72x256xf32, #tpu.memory_space<vmem>>, vector<4x240xf32>,
    %74 = vector.extract_strided_slice %1 {offsets = [0, 17], sizes = [4, 239], strides = [1, 1]} : vector<4x256xf32> to vector<4x239xf32>
    %75 = vector.extract_strided_slice %48 {offsets = [0, 0], sizes = [4, 239], strides = [1, 1]} : vector<4x256xf32> to vector<4x239xf32>
    %76 = arith.mulf %74, %75 : vector<4x239xf32>
    %c64 = arith.constant 64 : index
    %c0_23 = arith.constant 0 : index
    %77 = vector.load %arg7[%c64, %c0_23] : memref<72x256xf32, #tpu.memory_space<vmem>>, vector<4x239xf32>
    tpu.vector_store %arg7[%c64, %c0_23], %76 {strides = array<i32>} : memref<72x256xf32, #tpu.memory_space<vmem>>, vector<4x239xf32>,
    %c0_24 = arith.constant 0 : index
    %c0_25 = arith.constant 0 : index
    %78 = vector.load %arg2[%c0_24, %c0_25] : memref<32x72xbf16, #tpu.memory_space<vmem>>, vector<32x72xbf16>
    %c0_26 = arith.constant 0 : index
    %c0_27 = arith.constant 0 : index
    %79 = vector.load %arg7[%c0_26, %c0_27] : memref<72x256xf32, #tpu.memory_space<vmem>>, vector<72x256xf32>
    %80 = arith.truncf %79 : vector<72x256xf32> to vector<72x256xbf16>
    %cst_28 = arith.constant dense<0.000000e+00> : vector<32x256xf32>
    %81 = tpu.matmul %78, %80, %cst_28 {dimension_numbers = #tpu.dot_dimension_numbers<[1], [0], [0], [1], [0, 0, 1, 1], [], []>} : vector<32x72xbf16>, vector<72x256xbf16>, vector<32x256xf32> -> vector<32x256xf32>
    %c0_29 = arith.constant 0 : index
    %c0_30 = arith.constant 0 : index
    %82 = vector.load %arg3[%c0_29, %c0_30] : memref<32x1xf32, #tpu.memory_space<vmem>>, vector<32x1xf32>
    %83 = vector.broadcast %82 : vector<32x1xf32> to vector<32x256xf32>
    %84 = arith.addf %81, %83 : vector<32x256xf32>
    %85 = vector.extract_strided_slice %84 {offsets = [0, 0], sizes = [8, 256], strides = [1, 1]} : vector<32x256xf32> to vector<8x256xf32>
    %86 = vector.extract_strided_slice %21 {offsets = [0, 0], sizes = [1, 1], strides = [1, 1]} : vector<1x4xf32> to vector<1x1xf32>
    %87 = vector.broadcast %86 : vector<1x1xf32> to vector<8x256xf32>
    %88 = arith.mulf %85, %87 : vector<8x256xf32>
    %89 = vector.extract_strided_slice %84 {offsets = [8, 0], sizes = [8, 256], strides = [1, 1]} : vector<32x256xf32> to vector<8x256xf32>
    %90 = vector.extract_strided_slice %21 {offsets = [0, 1], sizes = [1, 1], strides = [1, 1]} : vector<1x4xf32> to vector<1x1xf32>
    %91 = vector.broadcast %90 : vector<1x1xf32> to vector<8x256xf32>
    %92 = arith.mulf %89, %91 : vector<8x256xf32>
    %93 = arith.addf %88, %92 : vector<8x256xf32>
    %94 = vector.extract_strided_slice %84 {offsets = [16, 0], sizes = [8, 256], strides = [1, 1]} : vector<32x256xf32> to vector<8x256xf32>
    %95 = vector.extract_strided_slice %21 {offsets = [0, 2], sizes = [1, 1], strides = [1, 1]} : vector<1x4xf32> to vector<1x1xf32>
    %96 = vector.broadcast %95 : vector<1x1xf32> to vector<8x256xf32>
    %97 = arith.mulf %94, %96 : vector<8x256xf32>
    %98 = arith.addf %93, %97 : vector<8x256xf32>
    %99 = vector.extract_strided_slice %84 {offsets = [24, 0], sizes = [8, 256], strides = [1, 1]} : vector<32x256xf32> to vector<8x256xf32>
    %100 = vector.extract_strided_slice %21 {offsets = [0, 3], sizes = [1, 1], strides = [1, 1]} : vector<1x4xf32> to vector<1x1xf32>
    %101 = vector.broadcast %100 : vector<1x1xf32> to vector<8x256xf32>
    %102 = arith.mulf %99, %101 : vector<8x256xf32>
    %103 = arith.addf %98, %102 : vector<8x256xf32>
    %c0_31 = arith.constant 0 : index
    %c0_32 = arith.constant 0 : index
    %c0_33 = arith.constant 0 : index
    %104 = vector.load %arg6[%c0_31, %c0_32, %c0_33] : memref<1x8x256xf32, #tpu.memory_space<vmem>>, vector<1x8x256xf32>
    %105 = vector.shape_cast %104 : vector<1x8x256xf32> to vector<8x256xf32>
    %106 = vector.shape_cast %103 : vector<8x256xf32> to vector<1x8x256xf32>
    tpu.vector_store %arg6[%c0_31, %c0_32, %c0_33], %106 {strides = array<i32>} : memref<1x8x256xf32, #tpu.memory_space<vmem>>, vector<1x8x256xf32>,
    return
  }
  func.func @transform_0(%arg0: i32) -> (i32, i32, i32) {
    %c0_i32 = arith.constant 0 : i32
    %c0_i32_0 = arith.constant 0 : i32
    %c0_i32_1 = arith.constant 0 : i32
    return %arg0, %c0_i32, %c0_i32_0 : i32, i32, i32
  }
  func.func @transform_1(%arg0: i32) -> (i32, i32) {
    %c0_i32 = arith.constant 0 : i32
    %c0_i32_0 = arith.constant 0 : i32
    %c0_i32_1 = arith.constant 0 : i32
    return %c0_i32, %c0_i32_0 : i32, i32
  }
  func.func @transform_2(%arg0: i32) -> (i32, i32) {
    %c0_i32 = arith.constant 0 : i32
    %c0_i32_0 = arith.constant 0 : i32
    %c0_i32_1 = arith.constant 0 : i32
    return %c0_i32, %c0_i32_0 : i32, i32
  }
  func.func @transform_3(%arg0: i32) -> (i32, i32) {
    %c0_i32 = arith.constant 0 : i32
    %c0_i32_0 = arith.constant 0 : i32
    %c0_i32_1 = arith.constant 0 : i32
    return %c0_i32, %c0_i32_0 : i32, i32
  }
  func.func @transform_4(%arg0: i32) -> (i32, i32) {
    %c0_i32 = arith.constant 0 : i32
    %c0_i32_0 = arith.constant 0 : i32
    %c0_i32_1 = arith.constant 0 : i32
    return %c0_i32, %c0_i32_0 : i32, i32
  }
  func.func @transform_5(%arg0: i32) -> (i32, i32, i32) {
    %c0_i32 = arith.constant 0 : i32
    %c0_i32_0 = arith.constant 0 : i32
    %c0_i32_1 = arith.constant 0 : i32
    return %arg0, %c0_i32, %c0_i32_0 : i32, i32, i32
  }
}

</mosaic_0001>

<bundles_post_ra>
// kernel: tpu_custom_call.1
= control target key start
LH: loop header
LB: loop body
LE: loop exit
PB: predicated region body
PF: predicated region fallthrough
CT: control target
= control target key end

     0   :  { %10 = vsyncpa [#allocation4], 0  ;;  %s1195_s0 = inlined_call_operand.vmem [shape: f32[2,4,256], index: 0, kind: input, shape index: {}]   ;;  %s1196_s1 = inlined_call_operand.vmem [shape: bf16[32,72], index: 1, kind: input, shape index: {}]   ;;  %s1197_s2 = inlined_call_operand.vmem [shape: f32[32,1], index: 2, kind: input, shape index: {}]   ;;  %s1198_s3 = inlined_call_operand.hbm [shape: f32[4,4], index: 3, kind: input, shape index: {}]   ;;  %s1199_s4 = inlined_call_operand.vmem [shape: f32[1,4], index: 4, kind: input, shape index: {}]   ;;  %s1200_s5 = inlined_call_operand.hbm [shape: f32[2,8,256], index: 5, kind: output, shape index: {}]  }
   0x1   :  { %11 = vsyncpa [#allocation5], 0 }
   0x2   :  { %13 = vsyncpa [#allocation5 + $0x1], 0  ;;  %s1017_s18 = smov 0   ;;  %s1019_s19 = smov 0  }
   0x3   :  { %s1021_s20 = smov 0   ;;  %s1023_s21 = smov 0  }
   0x4 LB: > { %s1038_s22 = sadd.s32 4294967295, %s972_s21   ;;  %s756_s23 = sadd.s32 4294967294, %s972_s21   ;;  %s972_s21 = sphi %s1023_s21, %s1206_s21   ;;  %s968_s20 = sphi %s1021_s20, %s1205_s20   ;;  %s964_s19 = sphi %s1019_s19, %s1204_s19   ;;  %s960_s18 = sphi %s1017_s18, %s1203_s18  }
   0x5   : > { %s1042_s24 = sadd.s32 1, %s972_s21   ;;  %s136_s25 = sadd.s32 1, %s968_s20 }
   0x6   : > { %s133_s26 = ssub.s32 %s972_s21, %s1042_s24  ;;  %p146_p0 = scmp.ne.s32.totalorder %s968_s20, %s964_s19 }
   0x7   : > { %p134_p1 = scmp.eq.s32.totalorder %s133_s26, 0  ;;  %p147_p2 = scmp.eq.s32.totalorder %s1038_s22, 1 }
   0x8   : > { %p152_p3 = scmp.ne.s32.totalorder %s964_s19, %s960_s18  ;;  %p153_p4 = scmp.eq.s32.totalorder %s756_s23, 1 }
   0x9   : > { %s1053_s27 = scalar_select %p134_p1, %s968_s20, %s136_s25  }
   0xa   : > { %p1055_p5 = por %p147_p2, %p146_p0  ;;  %p1059_p6 = por %p153_p4, %p152_p3 }
   0xb   : > { %p757_p7 = scmp.ge.s32.totalorder %s972_s21, 1  ;;  %p160_p8 = scmp.lt.s32.totalorder %s972_s21, 3 }
   0xc   : > { %p822_p9 = scmp.eq.s32.totalorder %s1038_s22, 0  ;;  %s178_s7 = sshll.u32 %s1198_s3, 4  ;;  %s179_s7 = int_to_ptr.hbm [resolvable:$true] %s178_s7 }
   0xd   : > { %p161_p10 = pnand %p757_p7, %p160_p8  ;;  %s974_s8 = smov [#allocation3]  }
   0xe   : > { %s180_s9 = sshll.u32 %s974_s8, 4  ;;  %s181_s9 = int_to_ptr.vmem [resolvable:$true] %s180_s9 }
   0xf   : > { %p814_p11 = pneg %p161_p10  ;;  %204 = sbr.rel (%p161_p10) target bundleno = 714 (0x2ca), region = 40 }
  0x11   : > { %p815_p12 = pnand %p822_p9, %p814_p11 }
  0x13   : > { %817 = dma.hbm_to_vmem [thread:$0]  (!%p815_p12), %s179_s7, 64, %s181_s9, [#allocation4]  }
  0x14   : > { %v308_v0 = vlaneseq }
  0x15   : > { %951 = dma.done.wait (%p822_p9), [#allocation4], 64  }
  0x16   : > { %953 = vsyncadd (%p822_p9), [#allocation4], 4294967232  ;;  %v975_v1 = vmov 0.0   ;;  %v309_v2 = vand.u32 127, %v308_v0  ;;  %p233_p13 = scmp.lt.s32.totalorder %s1038_s22, 1  ;;  %vm246_vm3 = vcmask 1043456  }
  0x17   : > { %290 = vst [vmem:[#allocation2] sm:$0xff] %v975_v1  ;;  %s976_s12 = smov 111   ;;  %s977_s13 = smov 127   ;;  %vm354_vm5 = vcmask 908288   ;;  %vm394_vm6 = vcmask 924672   ;;  %vm416_vm7 = vcmask 1039360  }
  0x18   : > { %291 = vst [vmem:[#allocation2 + $0x8] sm:$0xff] %v975_v1  ;;  %v310_v3 = vadd.s32 128, %v309_v2  ;;  %v315_v4 = vand.u32 15, %v309_v2  ;;  %s234_s10 = scalar_select %p233_p13, %s1038_s22, 1  ;;  %vm428_vm8 = vcmask 7168   ;;  %vm406_vm9 = vcmask 121856  }
  0x19   : > { %292 = vst [vmem:[#allocation2 + $0x10] sm:$0xff] %v975_v1  ;;  %s978_s17 = smov 15   ;;  %s979_s23 = smov 113   ;;  %vm366_vm10 = vcmask 138240   ;;  %v253_v63 = vld [vmem:[#allocation3] sm:$0xf] }
  0x1a   : > { %293 = vst [vmem:[#allocation2 + $0x18] sm:$0xff] %v975_v1  ;;  %v322_v5 = vand.u32 15, %v310_v3  ;;  %vm335_vm0 = vcmp.ne.s32.totalorder %v315_v4, 0  ;;  %s786_s11 = sshll.u32 %s234_s10, 3  ;;  %vm341_vm4 = vcmp.ne.s32.totalorder %v315_v4, 15  ;;  %s980_s25 = smov 1  }
  0x1b   : > { %294 = vst [vmem:[#allocation2 + $0x20] sm:$0xff] %v975_v1  ;;  %v765_v6 = vsel %vm335_vm0, 1.0, %v975_v1  ;;  %s237_s16 = scalar_lea.vmem %s1195_s0, %s786_s11  ;;  %v767_v12 = vsel %vm341_vm4, 1.0, %v975_v1  ;;  %s981_s26 = smov 17   ;;  %vm255_vm11 = vcmask 27648   ;;  %vm265_vm12 = vcmask 24576  }
  0x1c   : > { %295 = vst [vmem:[#allocation2 + $0x28] sm:$0xff] %v975_v1  ;;  %vm336_vm1 = vcmp.ne.s32.totalorder %v322_v5, 0  ;;  %vm342_vm2 = vcmp.ne.s32.totalorder %v322_v5, 15  ;;  %v1078_v13 = vld [vmem:[%s237_s16] sm:$0xff]  ;;  %s982_s30 = smov 112   ;;  %s983_s8 = smov 16  }
  0x1d   : > { %296 = vst [vmem:[#allocation2 + $0x30] sm:$0xff] %v975_v1  ;;  %v766_v7 = vsel %vm336_vm1, 1.0, %v975_v1  ;;  %v768_v9 = vsel %vm342_vm2, 1.0, %v975_v1  ;;  %vm460_vm13 = vcmask 1035264   ;;  %vm480_vm14 = vcmask 920576   ;;  %s985_s14 = smov 125  }
  0x1e   : > { %297 = vst [vmem:[#allocation2 + $0x38] sm:$0xff] %v975_v1  ;;  %v349_v8 = vrot.slane %v766_v7, 4  ;;  %v389_v11 = vrot.slane %v768_v9, 4  ;;  %v263_v9 = vld [vmem:[%s1199_s4] sm:$0x1]  ;;  %vm494_vm15 = vcmask 912384  }
  0x1f   : > { %298 = vst [vmem:[#allocation2 + $0x40] sm:$0xff] %v975_v1  ;;  %vm489_vm0 = vcmask 916480   ;;  %vm410_vm1 = vcmask 1043576   ;;  %vm514_vm2 = vcmask 904192   ;;  %vm432_vm4 = vcmask 1043464   ;;  %s230_s9 = sand.u32 1, %s964_s19  }
  0x20   : > { %299 = vst [vmem:[#allocation2 + $0x48] sm:$0xff] %v975_v1  ;;  %v350_v10 = vsel %vm246_vm3, %v765_v6, %v349_v8  ;;  %v390_v14 = vsel %vm246_vm3, %v767_v12, %v389_v11  ;;  %s762_s10 = sshll.u32 %s230_s9, 4  ;;  %s789_s11 = sshll.u32 %s1038_s22, 4 }
  0x21   : > { %300 = vst [vmem:[#allocation2 + $0x50] sm:$0xff] %v975_v1  ;;  %351 = vrot.lane.b32.xlu0 %v350_v10, %s976_s12  ;;  %413 = vrot.lane.b32.xlu1 %v350_v10, %s977_s13  ;;  %s232_s22 = scalar_lea.vmem [#allocation6], %s762_s10 }
  0x22   : > { %301 = vst [vmem:[#allocation2 + $0x58] sm:$0xff] %v975_v1  ;;  %462 = vrot.lane.b32.xlu2 %v350_v10, %s978_s17 }
  0x23   : > { %302 = vst [vmem:[#allocation2 + $0x60] sm:$0xff] %v975_v1 }
  0x24   : > { %303 = vst [vmem:[#allocation2 + $0x68] sm:$0xff] %v975_v1 }
  0x25   : > { %304 = vst [vmem:[#allocation2 + $0x70] sm:$0xff] %v975_v1 }
  0x26   : > { %305 = vst [vmem:[#allocation2 + $0x78] sm:$0xff] %v975_v1 }
  0x27   : > { %306 = vst [vmem:[#allocation2 + $0x80] sm:$0xff] %v975_v1 }
  0x28   : > { %307 = vst [vmem:[#allocation2 + $0x88] sm:$0xff] %v975_v1 }
  0x29   : > { %241 = vst [vmem:[#allocation1] ss:$2 sm:$0xff] %v1078_v13  ;;  %391 = vrot.lane.b32.xlu0 %v390_v14, %s979_s23  ;;  %442 = vrot.lane.b32.xlu1 %v390_v14, %s980_s25 }
  0x30   : > { %v242_v15 = vld.sshfl [vmem:[#allocation1] sm:$0xff pattern:$0x75316420]  ;;  %v243_v16 = vld.sshfl [vmem:[#allocation1 + $0x8] sm:$0xff pattern:$0x75316420] }
  0x31   : > { %496 = vrot.lane.b32.xlu0 %v390_v14, %s981_s26  ;;  %v247_v17 = vsel %vm246_vm3, %v242_v15, 0.0  ;;  %v248_v18 = vsel %vm246_vm3, %v243_v16, 0.0 }
  0x32   : > { %v249_v19 = vadd.f32 %v248_v18, %v247_v17 }
  0x4b   : > { %250 = vadd.xlane.f32.xlu2 %v249_v19 }
  0x7c   : > { %v463_v42 = vpop.permute.xlu2 %462 }
  0x7d   : > { %v464_v44 = vrot.slane %v463_v42, 4 }
  0x7f   : > { %v465_v48 = vsel %vm406_vm9, %v464_v44, %v463_v42 }
  0x80   : > { %v467_v49 = vmul.f32 %v465_v48, %v1078_v13 }
  0x93   : > { %v352_v20 = vpop.permute.xlu0 %351  ;;  %v414_v29 = vpop.permute.xlu1 %413 }
  0x94   : > { %v353_v21 = vrot.slane %v352_v20, 4  ;;  %v415_v31 = vrot.slane %v414_v29, 4 }
  0x96   : > { %v355_v22 = vsel %vm354_vm5, %v352_v20, %v353_v21  ;;  %v417_v34 = vsel %vm416_vm7, %v414_v29, %v415_v31 }
  0x97   : > { %v357_v23 = vmul.f32 %v355_v22, %v1078_v13  ;;  %v419_v35 = vmul.f32 %v417_v34, %v1078_v13 }
  0x99   : > { %359 = vst [vmem:[#allocation1] ss:$2 sm:$0xff] %v357_v23 }
  0x9b   : > { %v392_v24 = vpop.permute.xlu0 %391  ;;  %v443_v38 = vpop.permute.xlu1 %442 }
  0x9c   : > { %v393_v25 = vrot.slane %v392_v24, 4  ;;  %v444_v39 = vrot.slane %v443_v38, 4 }
  0x9e   : > { %v395_v28 = vsel %vm394_vm6, %v392_v24, %v393_v25  ;;  %v445_v43 = vsel %vm428_vm8, %v444_v39, %v443_v38 }
  0x9f   : > { %v397_v30 = vmul.f32 %v395_v28, %v1078_v13  ;;  %v447_v45 = vmul.f32 %v445_v43, %v1078_v13 }
  0xa0   : > { %v1089_v26 = vld.sshfl [vmem:[#allocation1] sm:$0xff pattern:$0x75316420]  ;;  %v361_v27 = vld.sshfl [vmem:[#allocation1 + $0x8] sm:$0xff pattern:$0x75316420] }
  0xa1   : > { %373 = vst [vmem:[#allocation1] ss:$2 sm:$0xff] %v1078_v13 }
  0xa3   : > { %v497_v52 = vpop.permute.xlu0 %496 }
  0xa4   : > { %v498_v53 = vrot.slane %v497_v52, 4 }
  0xa6   : > { %v499_v56 = vsel %vm366_vm10, %v498_v53, %v497_v52 }
  0xa7   : > { %v501_v57 = vmul.f32 %v499_v56, %v1078_v13 }
  0xa8   : > { %v1094_v32 = vld.sshfl [vmem:[#allocation1] sm:$0xff pattern:$0x75316420]  ;;  %v1096_v33 = vld.sshfl [vmem:[#allocation1 + $0x8] sm:$0xff pattern:$0x75316420] }
  0xa9   : > { %399 = vst [vmem:[#allocation1] ss:$2 sm:$0xff] %v397_v30 }
  0xb0   : > { %v400_v36 = vld.sshfl [vmem:[#allocation1] sm:$0xff pattern:$0x75316420]  ;;  %v401_v37 = vld.sshfl [vmem:[#allocation1 + $0x8] sm:$0xff pattern:$0x75316420] }
  0xb1   : > { %421 = vst [vmem:[#allocation1] ss:$2 sm:$0xff] %v419_v35 }
  0xb8   : > { %v422_v40 = vld.sshfl [vmem:[#allocation1] sm:$0xff pattern:$0x75316420]  ;;  %v423_v41 = vld.sshfl [vmem:[#allocation1 + $0x8] sm:$0xff pattern:$0x75316420] }
  0xb9   : > { %435 = vst [vmem:[#allocation1] ss:$2 sm:$0xff] %v1078_v13 }
  0xbe   : > { %v251_v61 = vpop.xlane.xlu2 %250 }
  0xbf   : > { %v252_v62 = vmul.f32 0.00390625, %v251_v61 }
  0xc0   : > { %v436_v46 = vld.sshfl [vmem:[#allocation1] sm:$0xff pattern:$0x75316420]  ;;  %v437_v47 = vld.sshfl [vmem:[#allocation1 + $0x8] sm:$0xff pattern:$0x75316420] }
  0xc1   : > { %449 = vst [vmem:[#allocation1] ss:$2 sm:$0xff] %v447_v45  ;;  %v254_v0 = vmul.f32 %v253_v63, %v252_v62 }
  0xc2   : > { %440 = vst [vmem:[#allocation2 + $0x40] sm:$0xf] %v436_v46 }
  0xc3   : > { %441 = vst [vmem:[#allocation2 + $0x48] sm:$0xf] %v437_v47  ;;  %v256_v1 = vsel %vm255_vm11, %v254_v0, 0.0 }
  0xc4   : > { %v257_v2 = vrot.slane %v256_v1, 4 }
  0xc6   : > { %v258_v3 = vadd.f32 %v257_v2, %v256_v1 }
  0xc8   : > { %v450_v50 = vld.sshfl [vmem:[#allocation1] sm:$0xff pattern:$0x75316420]  ;;  %v451_v51 = vld.sshfl [vmem:[#allocation1 + $0x8] sm:$0xff pattern:$0x75316420] }
  0xc9   : > { %454 = vrot.lane.b32.xlu2 %v451_v51, %s977_s13  ;;  %469 = vst [vmem:[#allocation1] ss:$2 sm:$0xff] %v467_v49  ;;  %v259_v4 = vrot.slane %v258_v3, 2  ;;  %v528_v46 = vld [vmem:[#allocation2 + $0x40] sm:$0xff] }
  0xca   : > { %v529_v42 = vld [vmem:[#allocation2 + $0x48] sm:$0xff] }
  0xcb   : > { %v260_v6 = vadd.f32 %v259_v4, %v258_v3 }
  0xcd   : > { %v261_v7 = vrot.slane %v260_v6, 1 }
  0xcf   : > { %v262_v8 = vadd.f32 %v261_v7, %v260_v6  ;;  %v787_v7 = vld [vmem:[%s1196_s1] sm:$0xff] }
  0xd0   : > { %v471_v54 = vld.sshfl [vmem:[#allocation1 + $0x8] sm:$0xff pattern:$0x75316420]  ;;  %v470_v55 = vld.sshfl [vmem:[#allocation1] sm:$0xff pattern:$0x75316420] }
  0xd1   : > { %474 = vrot.lane.b32.xlu0 %v471_v54, %s979_s23  ;;  %472 = vrot.lane.b32.xlu1 %v470_v55, %s979_s23  ;;  %482 = vst [vmem:[#allocation1] ss:$2 sm:$0xff] %v1078_v13  ;;  %v1122_v10 = vadd.f32 %v263_v9, %v262_v8  ;;  %v984_v8 = vmov 0   ;;  %s682_s23 = sshll.u32 %s232_s22, 4  ;;  %s683_s23 = int_to_ptr.vmem [resolvable:$true] %s682_s23 }
  0xd2   : > { %426 = vrot.lane.b32.xlu2 %v423_v41, %s980_s25  ;;  %870 = vset.pattern.permute.xlu0 %v984_v8 }
  0xd3   : > { %v266_v11 = vsel %vm265_vm12, %v1122_v10, -inf  ;;  %871 = vset.pattern.permute.xlu1 %v984_v8 }
  0xd8   : > { %v484_v58 = vld.sshfl [vmem:[#allocation1 + $0x8] sm:$0xff pattern:$0x75316420]  ;;  %v483_v59 = vld.sshfl [vmem:[#allocation1] sm:$0xff pattern:$0x75316420] }
  0xd9   : > { %487 = vrot.lane.b32.xlu0 %v484_v58, %s982_s30  ;;  %485 = vrot.lane.b32.xlu1 %v483_v59, %s982_s30  ;;  %503 = vst [vmem:[#allocation1] ss:$2 sm:$0xff] %v501_v57 }
  0xda   : > { %364 = vrot.lane.b32.xlu2 %v361_v27, %s981_s26 }
  0xe0   : > { %v504_v60 = vld.sshfl [vmem:[#allocation1] sm:$0xff pattern:$0x75316420]  ;;  %v505_v5 = vld.sshfl [vmem:[#allocation1 + $0x8] sm:$0xff pattern:$0x75316420] }
  0xe1   : > { %452 = vrot.lane.b32.xlu0 %v450_v50, %s977_s13  ;;  %506 = vrot.lane.b32.xlu1 %v504_v60, %s976_s12 }
  0xe9   : > { %402 = vrot.lane.b32.xlu0 %v400_v36, %s978_s17 }
  0xf1   : > { %404 = vrot.lane.b32.xlu0 %v401_v37, %s978_s17  ;;  %s986_s17 = smov 126  }
  0xf9   : > { %508 = vrot.lane.b32.xlu0 %v505_v5, %s976_s12 }
 0x101   : > { %424 = vrot.lane.b32.xlu0 %v422_v40, %s980_s25 }
 0x109   : > { %362 = vrot.lane.b32.xlu0 %v1089_v26, %s981_s26  ;;  %s669_s26 = scalar_lea.sflag [#allocation5], %s230_s9 }
 0x10b   : > { %267 = vmax.xlane.f32.xlu1 %v266_v11 }
 0x111   : > { %378 = vrot.lane.b32.xlu0 %v1096_v33, %s983_s8 }
 0x123   : > { %v455_v12 = vpop.permute.xlu2 %454 }
 0x124   : > { %461 = vst.msk [vmem:[#allocation2 + $0x58] sm:$0xf] %vm460_vm13, %v455_v12  ;;  %376 = vrot.lane.b32.xlu1 %v1094_v32, %s983_s8 }
 0x12b   : > { %v531_v43 = vld [vmem:[#allocation2 + $0x58] sm:$0xff] }
 0x12c   : > { %v427_v27 = vpop.permute.xlu2 %426  ;;  %v543_v49 = vpack.c.bf16 %v531_v43, %v529_v42 }
 0x134   : > { %v365_v44 = vpop.permute.xlu2 %364 }
 0x143   : > { %v475_v13 = vpop.permute.xlu0 %474  ;;  %v473_v14 = vpop.permute.xlu1 %472 }
 0x144   : > { %481 = vst.msk [vmem:[#allocation2 + $0x68] sm:$0xf] %vm480_vm14, %v475_v13  ;;  %v476_v15 = vsel %vm394_vm6, %v473_v14, %v475_v13  ;;  %vm384_vm6 = vcmask 1043584  }
 0x145   : > { %479 = vst [vmem:[#allocation2 + $0x60] sm:$0xf] %v476_v15 }
 0x14b   : > { %v488_v16 = vpop.permute.xlu0 %487  ;;  %v486_v17 = vpop.permute.xlu1 %485  ;;  %v533_v38 = vld [vmem:[#allocation2 + $0x68] sm:$0xff] }
 0x14c   : > { %495 = vst.msk [vmem:[#allocation2 + $0x78] sm:$0xf] %vm494_vm15, %v488_v16  ;;  %v490_v18 = vsel %vm489_vm0, %v486_v17, %v488_v16  ;;  %v532_v40 = vld [vmem:[#allocation2 + $0x60] sm:$0xff] }
 0x14d   : > { %493 = vst [vmem:[#allocation2 + $0x70] sm:$0xf] %v490_v18 }
 0x153   : > { %v453_v19 = vpop.permute.xlu0 %452  ;;  %v507_v24 = vpop.permute.xlu1 %506  ;;  %v535_v35 = vld [vmem:[#allocation2 + $0x78] sm:$0xff] }
 0x154   : > { %v456_v20 = vsel %vm416_vm7, %v453_v19, %v455_v12  ;;  %v534_v37 = vld [vmem:[#allocation2 + $0x70] sm:$0xff]  ;;  %v545_v39 = vpack.c.bf16 %v535_v35, %v533_v38  ;;  %vm582_vm7 = vcmask 588800  }
 0x155   : > { %459 = vst [vmem:[#allocation2 + $0x50] sm:$0xf] %v456_v20  ;;  %v544_v41 = vpack.c.bf16 %v534_v37, %v532_v40 }
 0x15b   : > { %v403_v21 = vpop.permute.xlu0 %402 }
 0x15c   : > { %411 = vst.msk [vmem:[#allocation2 + $0x20] sm:$0xf] %vm410_vm1, %v403_v21  ;;  %v530_v47 = vld [vmem:[#allocation2 + $0x50] sm:$0xff] }
 0x15d   : > { %v542_v51 = vpack.c.bf16 %v530_v47, %v528_v46 }
 0x163   : > { %v405_v22 = vpop.permute.xlu0 %404  ;;  %v524_v58 = vld [vmem:[#allocation2 + $0x20] sm:$0xff] }
 0x164   : > { %v407_v23 = vsel %vm406_vm9, %v403_v21, %v405_v22  ;;  %v549_v22 = vld [vmem:[%s1197_s2 + $0x8] sm:$0xff] }
 0x165   : > { %412 = vst [vmem:[#allocation2 + $0x28] sm:$0xf] %v407_v23  ;;  %v548_v23 = vld [vmem:[%s1197_s2] sm:$0xff] }
 0x16b   : > { %v509_v25 = vpop.permute.xlu0 %508 }
 0x16c   : > { %v510_v26 = vsel %vm354_vm5, %v507_v24, %v509_v25  ;;  %515 = vst.msk [vmem:[#allocation2 + $0x88] sm:$0xf] %vm514_vm2, %v509_v25  ;;  %vm370_vm5 = vcmask 1043592   ;;  %v525_v55 = vld [vmem:[#allocation2 + $0x28] sm:$0xff]  ;;  %v551_v25 = vld [vmem:[%s1197_s2 + $0x18] sm:$0xff] }
 0x16d   : > { %513 = vst [vmem:[#allocation2 + $0x80] sm:$0xf] %v510_v26  ;;  %v550_v24 = vld [vmem:[%s1197_s2 + $0x10] sm:$0xff] }
 0x173   : > { %v425_v28 = vpop.permute.xlu0 %424  ;;  %v537_v29 = vld [vmem:[#allocation2 + $0x88] sm:$0xff] }
 0x174   : > { %v429_v30 = vsel %vm428_vm8, %v425_v28, %v427_v27  ;;  %433 = vst.msk [vmem:[#allocation2 + $0x30] sm:$0xf] %vm432_vm4, %v425_v28  ;;  %v547_v31 = vpack.c.bf16 %v537_v29, %v537_v29  ;;  %v536_v32 = vld [vmem:[#allocation2 + $0x80] sm:$0xff] }
 0x175   : > { %434 = vst [vmem:[#allocation2 + $0x38] sm:$0xf] %v429_v30  ;;  %v546_v33 = vpack.c.bf16 %v536_v32, %v536_v32 }
 0x176   : > { %v593_v34 = vsel %vm246_vm3, %v547_v31, 0 }
 0x177   : > { %617 = vmatpush.bf16.msra.mxu1 %v593_v34  ;;  %795 = vmatpush.bf16.msra.mxu3 %v593_v34  ;;  %v590_v36 = vsel %vm246_vm3, %v546_v33, 0  ;;  %vm380_vm3 = vcmask 130048  }
 0x178   : > { %598 = vmatpush.bf16.msra.mxu0 %v590_v36  ;;  %790 = vmatpush.bf16.msra.mxu2 %v590_v36 }
 0x17b   : > { %618 = vmatpush.bf16.msra.mxu1 %v545_v39  ;;  %796 = vmatpush.bf16.msra.mxu3 %v545_v39  ;;  %v363_v45 = vpop.permute.xlu0 %362  ;;  %v526_v54 = vld [vmem:[#allocation2 + $0x30] sm:$0xff] }
 0x17c   : > { %v367_v48 = vsel %vm366_vm10, %v363_v45, %v365_v44  ;;  %371 = vst.msk [vmem:[#allocation2] sm:$0xf] %vm370_vm5, %v363_v45  ;;  %599 = vmatpush.bf16.msra.mxu0 %v544_v41  ;;  %791 = vmatpush.bf16.msra.mxu2 %v544_v41  ;;  %v527_v52 = vld [vmem:[#allocation2 + $0x38] sm:$0xff]  ;;  %v540_v59 = vpack.c.bf16 %v526_v54, %v524_v58 }
 0x17d   : > { %372 = vst [vmem:[#allocation2 + $0x8] sm:$0xf] %v367_v48  ;;  %v541_v57 = vpack.c.bf16 %v527_v52, %v525_v55 }
 0x17e   : > { %v268_v50 = vpop.xlane.xlu1 %267 }
 0x17f   : > { %v269_v53 = vsub.f32 %v1122_v10, %v268_v50  ;;  %619 = vmatpush.bf16.msra.mxu1 %v543_v49  ;;  %797 = vmatpush.bf16.msra.mxu3 %v543_v49  ;;  %v788_v10 = vld [vmem:[%s1196_s1 + $0x8] sm:$0xff] }
 0x180   : > { %600 = vmatpush.bf16.msra.mxu0 %v542_v51  ;;  %792 = vmatpush.bf16.msra.mxu2 %v542_v51 }
 0x181   : > { %v270_v56 = vmul.f32 1.442695, %v269_v53 }
 0x183   : > { %872 = vpow2.f32 %v270_v56  ;;  %620 = vmatpush.bf16.msra.mxu1 %v541_v57  ;;  %798 = vmatpush.bf16.msra.mxu3 %v541_v57  ;;  %v379_v62 = vpop.permute.xlu0 %378  ;;  %v520_v1 = vld [vmem:[#allocation2] sm:$0xff] }
 0x184   : > { %601 = vmatpush.bf16.msra.mxu0 %v540_v59  ;;  %793 = vmatpush.bf16.msra.mxu2 %v540_v59  ;;  %v521_v4 = vld [vmem:[#allocation2 + $0x8] sm:$0xff] }
 0x189   : > { %v873_v60 = vpop.eup %872 }
 0x18a   : > { %v272_v61 = vsel %vm265_vm12, %v873_v60, 0.0 }
 0x18b   : > { %273 = vadd.xlane.f32.xlu2 %v272_v61 }
 0x196   : > { %v377_v63 = vpop.permute.xlu1 %376 }
 0x197   : > { %v381_v0 = vsel %vm380_vm3, %v377_v63, %v379_v62  ;;  %385 = vst.msk [vmem:[#allocation2 + $0x10] sm:$0xf] %vm384_vm6, %v377_v63 }
 0x198   : > { %386 = vst [vmem:[#allocation2 + $0x18] sm:$0xf] %v381_v0 }
 0x19e   : > { %v522_v2 = vld [vmem:[#allocation2 + $0x10] sm:$0xff] }
 0x19f   : > { %v538_v3 = vpack.c.bf16 %v522_v2, %v520_v1  ;;  %v523_v5 = vld [vmem:[#allocation2 + $0x18] sm:$0xff] }
 0x1a0   : > { %v539_v6 = vpack.c.bf16 %v523_v5, %v521_v4 }
 0x1a1   : > { %602 = vmatpush.bf16.msra.mxu0 %v538_v3  ;;  %794 = vmatpush.bf16.msra.mxu2 %v538_v3 }
 0x1a2   : > { %621 = vmatpush.bf16.msra.mxu1 %v539_v6  ;;  %799 = vmatpush.bf16.msra.mxu3 %v539_v6 }
 0x1a4   : > { %777 = vmatmul.msk.bf16.vlgmr.msra.gmra.mxu0 %vm582_vm7, %v787_v7  ;;  %778 = vmatmul.msk.bf16.vlgmr.msra.gmra.mxu2 %vm582_vm7, %v788_v10 }
 0x1a5   : > { %779 = vmatmul.msk.bf16.vlgmr.msra.gmra.mxu1 %vm582_vm7, %v787_v7  ;;  %780 = vmatmul.msk.bf16.vlgmr.msra.gmra.mxu3 %vm582_vm7, %v788_v10 }
 0x1fe   : > { %v274_v9 = vpop.xlane.xlu2 %273 }
 0x1ff   : > { %874 = vrcp.f32 %v274_v9  ;;  %v286_v14 = vand.u32 2147483648, %v274_v9  ;;  %v284_v16 = vand.u32 2147483647, %v274_v9  ;;  %vm280_vm9 = vweird.f32 %v274_v9 }
 0x201   : > { %v287_v18 = vor.u32 1.1754944e-38, %v286_v14  ;;  %vm285_vm11 = vcmp.eq.f32.partialorder %v284_v16, 8.507059e+37 }
 0x205   : > { %v875_v11 = vpop.eup %874 }
 0x206   : > { %v276_v12 = vmul.f32 %v875_v11, %v274_v9  ;;  %vm281_vm8 = vweird.f32 %v875_v11 }
 0x207   : > { %vm282_vm10 = vmor %vm280_vm9, %vm281_vm8 }
 0x208   : > { %v277_v13 = vsub.f32 1.0, %v276_v12 }
 0x20a   : > { %v278_v15 = vmul.f32 %v875_v11, %v277_v13 }
 0x20c   : > { %v279_v17 = vadd.f32 %v875_v11, %v278_v15 }
 0x20e   : > { %v283_v19 = vsel %vm282_vm10, %v875_v11, %v279_v17 }
 0x20f   : > { %v288_v20 = vsel %vm285_vm11, %v287_v18, %v283_v19 }
 0x210   : > { %v289_v21 = vmul.f32 %v873_v60, %v288_v20 }
 0x212   : > { %657 = vrot.lane.b32.xlu1 %v289_v21, %s985_s14  ;;  %639 = vrot.lane.b32.xlu0 %v289_v21, %s977_s13  ;;  %800 = vpush %v289_v21 }
 0x21a   : > { %648 = vrot.lane.b32.xlu0 %v289_v21, %s986_s17  ;;  %559 = vperm.xlu1 %871, %v549_v22   ;;  %s680_s17 = scalar_lea.hbm %s1200_s5, %s789_s11 }
 0x21b   : > { %s684_s25 = sshll.u32 %s680_s17, 4  ;;  %s685_s25 = int_to_ptr.hbm [resolvable:$true] %s684_s25 }
 0x21c   : > { %s920_s30 = sshra.s32 %s685_s25, 4  ;;  %s921_s30 = int_to_ptr.hbm [resolvable:$true] %s920_s30 }
 0x21d   : > { %s922_s6 = scalar_lea.hbm %s921_s30, 16  ;;  %p927_p3 = scmp.lt.s32.totalorder %s921_s30, %s1200_s5 }
 0x21e   : > { %p923_p0 = scmp.ne.s32.totalorder %s921_s30, %s922_s6 }
 0x220   : > { %p924_p1 = pnand %p923_p0, %p1055_p5 }
 0x221   : > { %v604_v29 = vpop.f32.mrf.mxu0 }
 0x222   : > { %554 = vperm.xlu0 %870, %v548_v23   ;;  %564 = vperm.xlu1 %871, %v550_v24   ;;  %v623_v30 = vpop.f32.mrf.mxu1  ;;  %p925_p2 = pneg %p924_p1 }
 0x227   : > { %v609_v32 = vpop.f32.mrf.mxu2 }
 0x228   : > { %v628_v33 = vpop.f32.mrf.mxu3 }
 0x229   : > { %v606_v35 = vpop.f32.mrf.mxu0 }
 0x22a   : > { %569 = vperm.xlu0 %870, %v551_v25   ;;  %v625_v36 = vpop.f32.mrf.mxu1 }
 0x22f   : > { %v611_v44 = vpop.f32.mrf.mxu2 }
 0x230   : > { %v630_v47 = vpop.f32.mrf.mxu3 }
 0x243   : > { %s801_s7 = spop %800 }
 0x244   : > { %v635_v45 = vstv %s801_s7 }
 0x284   : > { %v640_v26 = vpop.permute.xlu0 %639  ;;  %v658_v28 = vpop.permute.xlu1 %657 }
 0x285   : > { %802 = vpush %v640_v26 }
 0x28c   : > { %v649_v27 = vpop.permute.xlu0 %648  ;;  %v560_v31 = vpop.permute.xlu1 %559 }
 0x28d   : > { %804 = vpush %v649_v27  ;;  %v607_v39 = vadd.f32 %v606_v35, %v560_v31  ;;  %v626_v41 = vadd.f32 %v625_v36, %v560_v31 }
 0x28e   : > { %806 = vpush %v658_v28 }
 0x294   : > { %v555_v34 = vpop.permute.xlu0 %554  ;;  %v565_v42 = vpop.permute.xlu1 %564 }
 0x295   : > { %v605_v38 = vadd.f32 %v604_v29, %v555_v34  ;;  %v624_v40 = vadd.f32 %v623_v30, %v555_v34  ;;  %v610_v51 = vadd.f32 %v609_v32, %v565_v42  ;;  %v629_v52 = vadd.f32 %v628_v33, %v565_v42 }
 0x297   : > { %v637_v49 = vmul.f32 %v635_v45, %v605_v38  ;;  %v638_v50 = vmul.f32 %v635_v45, %v624_v40 }
 0x29c   : > { %v570_v48 = vpop.permute.xlu0 %569 }
 0x29d   : > { %v612_v54 = vadd.f32 %v611_v44, %v570_v48  ;;  %v631_v55 = vadd.f32 %v630_v47, %v570_v48 }
 0x2b6   : > { %s803_s8 = spop %802 }
 0x2b7   : > { %v642_v37 = vstv %s803_s8  ;;  %s926_s8 = scalar_lea.hbm %s1200_s5, 32 }
 0x2b8   : > { %v644_v43 = vmul.f32 %v642_v37, %v607_v39  ;;  %v645_v46 = vmul.f32 %v642_v37, %v626_v41  ;;  %p928_p4 = scmp.lt.s32.totalorder %s926_s8, %s922_s6 }
 0x2ba   : > { %v646_v53 = vadd.f32 %v644_v43, %v637_v49  ;;  %v647_v57 = vadd.f32 %v645_v46, %v638_v50  ;;  %p929_p7 = por %p928_p4, %p927_p3 }
 0x2bc   : > { %p930_p8 = pnand %p929_p7, %p925_p2 }
 0x2be   : > { %s805_s12 = spop %804 }
 0x2bf   : > { %v651_v56 = vstv %s805_s12  ;;  %s807_s14 = spop %806 }
 0x2c0   : > { %v653_v58 = vmul.f32 %v651_v56, %v610_v51  ;;  %v654_v59 = vmul.f32 %v651_v56, %v629_v52  ;;  %v660_v60 = vstv %s807_s14 }
 0x2c1   : > { %v662_v63 = vmul.f32 %v660_v60, %v612_v54  ;;  %v663_v0 = vmul.f32 %v660_v60, %v631_v55 }
 0x2c2   : > { %v655_v61 = vadd.f32 %v653_v58, %v646_v53  ;;  %v656_v62 = vadd.f32 %v654_v59, %v647_v57 }
 0x2c4   : > { %v664_v1 = vadd.f32 %v662_v63, %v655_v61  ;;  %v665_v2 = vadd.f32 %v663_v0, %v656_v62 }
 0x2c6   : > { %666 = vst [vmem:[%s232_s22] sm:$0xff] %v664_v1 }
 0x2c7   : > { %667 = vst [vmem:[%s232_s22 + $0x8] sm:$0xff] %v665_v2 }
 0x2c8   : > { %933 = shalt.err (!%p930_p8)
}
 0x2c9   : > { %812 = dma.vmem_to_hbm [thread:$0]  (%p1055_p5), %s683_s23, 256, %s685_s25, %s669_s26  }
 0x2ca PF: > { %p824_p9 = scmp.ge.s32.totalorder %s972_s21, 2  ;;  %s696_s9 = sand.u32 1, %s960_s18  }
 0x2cb   : > { %s697_s12 = scalar_lea.sflag [#allocation5], %s696_s9 }
 0x2cc   : > { %p819_p10 = pnand %p824_p9, %p1059_p6 }
 0x2ce   : > { %p820_p11 = pneg %p819_p10 }
 0x2d0   : > { %955 = dma.done.wait (%p820_p11), %s697_s12, 256  }
 0x2d1   : > { %957 = vsyncadd (%p820_p11), %s697_s12, 4294967040  ;;  %p16_p12 = scmp.ge.s32.totalorder %s1042_s24, 4   ;;  %s1203_s18 = smov %s964_s19 }
 0x2d2   : > { %s1204_s19 = smov %s968_s20  ;;  %s1205_s20 = smov %s1053_s27 }
 0x2d3   : > { %s1206_s21 = smov %s1042_s24  ;;  %18 = sbr.rel (!%p16_p12) target bundleno = 4 (0x4), region = 80 }
 0x2d8   :  { %703 = vsyncpa [#allocation4], 1 }
 0x2d9   :  { %705 = vsyncpa [#allocation4 + $0x1], 1 }
 0x2da   :  { %706 = vsyncpa [#allocation5], 1 }
 0x2db   :  { %708 = vsyncpa [#allocation5 + $0x1], 1 }

</bundles_post_ra>
